<compile_context>
chip_gen: v6e
topology: v6e:2x2x1
jax: 0.10.0
libtpu: 0.0.40
codegen_flags: <defaults>
</compile_context>

<pallas_src>
import jax
import jax.numpy as jnp
from jax.experimental import pallas as pl
from jax.experimental.pallas import tpu as pltpu


def _copy_kernel(src_ref, dst_ref):
    # Hot path: stream one lane-dense tile of the prototype table through VMEM.
    dst_ref[...] = src_ref[...]


def _per_block_budget_bytes() -> int:
    """Per-block byte budget so 4 resident buffers (in+out, double-buffered)
    stay safely under each generation's scoped-VMEM default."""
    try:
        kind = jax.devices()[0].device_kind.lower()
    except Exception:
        return 2 * 1024 * 1024
    if "v5 lite" in kind or "v5e" in kind or "v5litepod" in kind:
        return 2 * 1024 * 1024   # v5e: 16 MiB scoped default -> stay at 8 MiB resident
    if "v6" in kind or "v7" in kind:
        return 4 * 1024 * 1024   # v6e/v7x: 16 MiB resident, under 32 MiB scoped default
    return 2 * 1024 * 1024       # unknown chip: conservative


def _pallas_identity_copy(weight: jax.Array, donate: bool = False) -> jax.Array:
    """Streaming identity copy of the prototype table via Pallas."""
    num_classes, feat_dim = weight.shape
    dtype = weight.dtype
    itemsize = jnp.dtype(dtype).itemsize
    total = num_classes * feat_dim
    budget = _per_block_budget_bytes()

    # Present a wide lane-dense 2D view when possible (metadata-only reshape
    # for a contiguous row-major array): unmasked full-width vld/vst regardless
    # of feat_dim, and block shape chosen purely by byte budget.
    width = None
    for cand in (4096, 2048, 1024, 512, 256, 128):
        if total % cand == 0:
            width = cand
            break
    if width is not None:
        rows_total = total // width
        x2 = weight.reshape(rows_total, width)
    else:
        # Ragged total: keep original layout; block last dim == full feat_dim
        # is always legal even if feat_dim % 128 != 0.
        rows_total, width = num_classes, feat_dim
        x2 = weight

    # Row tile: multiple of 8 sized by the byte budget; partial last block is
    # legal (full-width last dim + multiple-of-8 row tile + pl.cdiv grid).
    if rows_total <= 8:
        tm = rows_total  # block equals full array dim -> legal for tiny tables
    else:
        rows_by_budget = max(8, (budget // (width * itemsize)) // 8 * 8)
        tm = min(rows_total, rows_by_budget)

    call_kwargs = {}
    if donate:
        # Only beneficial when the caller donates the weight buffer; otherwise
        # XLA inserts a defensive copy and the alias becomes a pessimization.
        call_kwargs["input_output_aliases"] = {0: 0}

    out2 = pl.pallas_call(
        _copy_kernel,
        out_shape=jax.ShapeDtypeStruct((rows_total, width), dtype),
        grid=(pl.cdiv(rows_total, tm),),
        in_specs=[pl.BlockSpec((tm, width), lambda i: (i, 0))],
        out_specs=pl.BlockSpec((tm, width), lambda i: (i, 0)),
        compiler_params=pltpu.CompilerParams(
            dimension_semantics=("parallel",)),  # splits across v7x's 2 TCs
        **call_kwargs,
    )(x2)
    return out2.reshape(num_classes, feat_dim)


def learnable_prototypes_forward(class_embeddings_weight: jax.Array,
                                 use_pallas_copy: bool = False,
                                 donate: bool = False) -> jax.Array:
    """Equivalent of Learnable_Prototypes.forward(): returns the prototype matrix.

    Default path: return the parameter directly (no HBM traffic, no launch) --
    this is the correct "optimization" for a pure identity forward.
    use_pallas_copy=True runs the streaming Pallas copy instead (only needed if
    a framework contract requires a distinct output buffer).
    """
    if not use_pallas_copy:
        return class_embeddings_weight
    return _pallas_identity_copy(class_embeddings_weight, donate=donate)


if __name__ == "__main__":
    num_classes = 4
    feat_dim = 256

    # Deterministic parameter init: nn.Embedding default init is N(0, 1).
    key = jax.random.PRNGKey(0)
    class_embeddings_weight = jax.random.normal(
        key, (num_classes, feat_dim), dtype=jnp.float32)

    # Fast path (recommended): identity return of the parameter.
    out_fast = learnable_prototypes_forward(class_embeddings_weight)
    assert out_fast.shape == (num_classes, feat_dim)
    assert bool(jnp.array_equal(out_fast, class_embeddings_weight))

    # Pallas copy path (exercised here so the kernel compiles and runs on TPU).
    out = learnable_prototypes_forward(class_embeddings_weight,
                                       use_pallas_copy=True)
    out = jax.block_until_ready(out)

    assert out.shape == (num_classes, feat_dim)
    assert out.dtype == jnp.float32
    assert bool(jnp.array_equal(out, class_embeddings_weight))

    print("KERNEL_OK")
</pallas_src>

<mosaic_0001>
module attributes {stable_mosaic.version = 11 : i64} {
  func.func @_copy_kernel(%arg0: i32, %arg1: memref<1x1024xf32, #tpu.memory_space<vmem>>, %arg2: memref<1x1024xf32, #tpu.memory_space<vmem>>) attributes {dimension_semantics = [#tpu.dimension_semantics<parallel>], iteration_bounds = array<i64: 1>, scalar_prefetch = 0 : i64, scratch_operands = 0 : i64, tpu.core_type = #tpu.core_type<tc>, window_params = [{transform_indices = @transform_0, window_bounds = array<i64: 1, 1024>}, {transform_indices = @transform_1, window_bounds = array<i64: 1, 1024>}]} {
    %c0 = arith.constant 0 : index
    %c0_0 = arith.constant 0 : index
    %0 = vector.load %arg1[%c0, %c0_0] : memref<1x1024xf32, #tpu.memory_space<vmem>>, vector<1x1024xf32>
    %c0_1 = arith.constant 0 : index
    %c0_2 = arith.constant 0 : index
    %1 = vector.load %arg2[%c0_1, %c0_2] : memref<1x1024xf32, #tpu.memory_space<vmem>>, vector<1x1024xf32>
    tpu.vector_store %arg2[%c0_1, %c0_2], %0 {strides = array<i32>} : memref<1x1024xf32, #tpu.memory_space<vmem>>, vector<1x1024xf32>,
    return
  }
  func.func @transform_0(%arg0: i32) -> (i32, i32) {
    %c0_i32 = arith.constant 0 : i32
    %c0_i32_0 = arith.constant 0 : i32
    return %arg0, %c0_i32 : i32, i32
  }
  func.func @transform_1(%arg0: i32) -> (i32, i32) {
    %c0_i32 = arith.constant 0 : i32
    %c0_i32_0 = arith.constant 0 : i32
    return %arg0, %c0_i32 : i32, i32
  }
}

</mosaic_0001>

<bundles_post_ra>
// kernel: tpu_custom_call.1
= control target key start
LH: loop header
LB: loop body
LE: loop exit
PB: predicated region body
PF: predicated region fallthrough
CT: control target
= control target key end

     0   :  { %6 = vsyncpa [#allocation3], 0  ;;  %s102_s0 = inlined_call_operand.hbm [shape: f32[1,1024], index: 0, kind: input, shape index: {}]   ;;  %s103_s1 = inlined_call_operand.hbm [shape: f32[1,1024], index: 1, kind: output, shape index: {}]  }
   0x1   :  { %7 = vsyncpa [#allocation4], 0  ;;  %s84_s6 = smov [#allocation2]  }
   0x2   :  { %s14_s7 = sshll.u32 %s84_s6, 4  ;;  %s15_s7 = int_to_ptr.vmem [resolvable:$true] %s14_s7 }
   0x3   :  { %s48_s8 = scalar_lea.vmem %s15_s7, 128  ;;  %p53_p1 = scmp.lt.s32.totalorder %s15_s7, %s15_s7 }
   0x4   :  { %p49_p0 = scmp.ne.s32.totalorder %s15_s7, %s48_s8  ;;  %p54_p2 = scmp.lt.s32.totalorder %s48_s8, %s48_s8 }
   0x6   :  { %p55_p3 = por %p54_p2, %p53_p1 }
   0x8   :  { %p56_p4 = pnand %p55_p3, %p49_p0 }
   0xa   :  { %59 = shalt.err (!%p56_p4)
}
   0xb   :  { %17 = dma.hbm_to_vmem [thread:$0]  %s102_s0, 128, %s15_s7, [#allocation3]  }
   0xc   :  { %80 = dma.done.wait [#allocation3], 128  }
   0xd   :  { %81 = vsyncadd [#allocation3], 4294967168  ;;  %s85_s11 = smov [#allocation5]   ;;  %v21_v0 = vld [vmem:[#allocation2] sm:$0xff] }
   0xe   :  { %s29_s12 = sshll.u32 %s85_s11, 4  ;;  %22 = vst [vmem:[#allocation5] sm:$0xff] %v21_v0  ;;  %s30_s12 = int_to_ptr.vmem [resolvable:$true] %s29_s12 }
   0xf   :  { %s60_s13 = scalar_lea.vmem %s30_s12, 128  ;;  %p65_p6 = scmp.lt.s32.totalorder %s30_s12, %s30_s12 }
  0x10   :  { %p61_p5 = scmp.ne.s32.totalorder %s30_s12, %s60_s13  ;;  %p66_p7 = scmp.lt.s32.totalorder %s60_s13, %s60_s13 }
  0x12   :  { %p67_p8 = por %p66_p7, %p65_p6 }
  0x14   :  { %p68_p9 = pnand %p67_p8, %p61_p5 }
  0x16   :  { %71 = shalt.err (!%p68_p9)
}
  0x17   :  { %32 = dma.vmem_to_hbm [thread:$0]  %s30_s12, 128, %s103_s1, [#allocation4]  }
  0x18   :  { %82 = dma.done.wait [#allocation4], 128  }
  0x19   :  { %83 = vsyncadd [#allocation4], 4294967168 }
  0x1a   :  { %36 = vsyncpa [#allocation3], 1 }
  0x1b   :  { %37 = vsyncpa [#allocation4], 1 }

</bundles_post_ra>
